<compile_context>
chip_gen: v6e
topology: v6e:2x2x1
jax: 0.10.0
libtpu: 0.0.40
codegen_flags: <defaults>
</compile_context>

<pallas_src>
import functools

import jax
import jax.numpy as jnp
from jax import lax
from jax.experimental import pallas as pl
from jax.experimental.pallas import tpu as pltpu


def _round_up(x, m):
    return ((x + m - 1) // m) * m


def _obs_loss_kernel(y_ref, pred_ref, nan_ref, out_ref,
                     row_sum_ref, lens_ref, *, B, N, TB, TN):
    bi = pl.program_id(0)          # batch-tile index   ("parallel")
    ki = pl.program_id(1)          # reduction-tile idx ("arbitrary", last)
    nk = pl.num_programs(1)

    # --- init per-row accumulators at the start of each reduction sweep ---
    @pl.when(ki == 0)
    def _():
        row_sum_ref[...] = jnp.zeros_like(row_sum_ref)
        lens_ref[...] = jnp.zeros_like(lens_ref)

    n_chunks = TN // 128

    def accumulate(last_tile):
        # Fold TN in 128-lane chunks with plain VPU adds into lane-dense
        # (TB, 128) scratch.  No iota/mask and no XLU reduce in steady state.
        for c in range(n_chunks):
            if last_tile:
                # Inside this branch ki == nk - 1, so offsets are static.
                start = (nk - 1) * TN + c * 128
                if start >= N:
                    break                      # chunk fully out of bounds
            sl = slice(c * 128, (c + 1) * 128)
            d = y_ref[:, sl] - pred_ref[:, sl]
            sq = d * d                                             # (TB, 128)
            cnt = jnp.where(jnp.isnan(nan_ref[:, sl]), 0.0, 1.0)   # (TB, 128)
            if last_tile and start + 128 > N:
                # Only the single straddling chunk pays for the mask.
                lane = lax.broadcasted_iota(jnp.int32, (1, 128), 1)
                valid = lane < (N - start)
                sq = jnp.where(valid, sq, 0.0)       # select => NaN/Inf safe
                cnt = jnp.where(valid, cnt, 0.0)
            row_sum_ref[...] += sq
            lens_ref[...] += cnt

    if N % TN != 0:
        @pl.when(ki == nk - 1)
        def _():
            accumulate(True)

        @pl.when(ki != nk - 1)
        def _():
            accumulate(False)
    else:
        accumulate(False)

    # --- finalize: one XLU lane-reduce, divide, mask padded rows, emit ---
    @pl.when(ki == nk - 1)
    def _():
        row_total = jnp.sum(row_sum_ref[...], axis=1, keepdims=True)   # (TB,1)
        len_total = jnp.sum(lens_ref[...], axis=1, keepdims=True)      # (TB,1)
        # NOTE: a *real* all-NaN row (lens == 0) yields inf/NaN, exactly like
        # the PyTorch module; padded rows are masked out below (NaN-safe).
        means = row_total / len_total                                  # (TB,1)
        if B % TB != 0:
            row = lax.broadcasted_iota(jnp.int32, (TB, 1), 0) + bi * TB
            means = jnp.where(row < B, means, 0.0)
        partial = jnp.sum(means)                                       # scalar
        # Lane-dense (1, 8, 128) output block; wrapper reads [:, 0, 0].
        out_ref[...] = jnp.broadcast_to(partial, out_ref.shape)


def _vmem_limit_bytes(tb, tn):
    """Generation-aware scoped-VMEM limit from the actual tile footprint."""
    tile = tb * tn * 4
    footprint = 3 * 2 * tile + 2 * tb * 128 * 4 + 2 * 8 * 128 * 4
    phys = 128 * 1024 * 1024
    try:
        info = pltpu.get_tpu_info()
        phys = int(getattr(info, "vmem_capacity_bytes", phys))
    except Exception:
        pass
    # v7x has only 64 MiB physical VMEM per TensorCore -> keep scoped <=48 MiB;
    # v5e/v6e (128 MiB physical) can afford 64 MiB.
    cap = 48 * 1024 * 1024 if phys <= 64 * 1024 * 1024 else 64 * 1024 * 1024
    want = max(32 * 1024 * 1024, int(footprint * 1.25) + (1 << 20))
    return min(cap, want)


def obs_loss(Y_l, pred_l, nan_array, *, tb=None, tn=None):
    """Pallas OBS_loss. Y_l, pred_l, nan_array: (B, N) float32 -> f32 scalar."""
    B, N = Y_l.shape
    assert pred_l.shape == (B, N) and nan_array.shape == (B, N)

    if tb is None:
        if B >= 16:
            # Guarantee >= 2 batch blocks so the leading "parallel" axis has
            # work for both v7x TensorCores (harmless on v5e/v6e).
            tb = min(_round_up((B + 1) // 2, 8), 256)
        else:
            tb = _round_up(B, 8)
    if tn is None:
        tn = min(_round_up(N, 128), 4096)
    assert tb % 8 == 0 and tn % 128 == 0

    nb = pl.cdiv(B, tb)
    nk = pl.cdiv(N, tn)

    kernel = functools.partial(_obs_loss_kernel, B=B, N=N, TB=tb, TN=tn)

    partials = pl.pallas_call(
        kernel,
        out_shape=jax.ShapeDtypeStruct((nb, 8, 128), jnp.float32),
        grid_spec=pltpu.PrefetchScalarGridSpec(
            num_scalar_prefetch=0,
            grid=(nb, nk),
            in_specs=[
                pl.BlockSpec((tb, tn), lambda bi, ki: (bi, ki)),
                pl.BlockSpec((tb, tn), lambda bi, ki: (bi, ki)),
                pl.BlockSpec((tb, tn), lambda bi, ki: (bi, ki)),
            ],
            out_specs=pl.BlockSpec((1, 8, 128), lambda bi, ki: (bi, 0, 0)),
            scratch_shapes=[
                pltpu.VMEM((tb, 128), jnp.float32),   # row_sum accumulator
                pltpu.VMEM((tb, 128), jnp.float32),   # lens accumulator
            ],
        ),
        compiler_params=pltpu.CompilerParams(
            dimension_semantics=("parallel", "arbitrary"),
            vmem_limit_bytes=_vmem_limit_bytes(tb, tn),
        ),
        cost_estimate=pl.CostEstimate(
            flops=5 * B * N,
            transcendentals=0,
            bytes_accessed=3 * B * N * 4 + nb * 8 * 128 * 4,
        ),
    )(Y_l, pred_l, nan_array)

    # Tiny host-side finish: sum the nb per-block partials, divide by true B.
    return (jnp.sum(partials[:, 0, 0]) / jnp.float32(B)).astype(jnp.float32)


def obs_loss_ref(Y_l, pred_l, nan_array):
    """Pure-JAX reference matching the PyTorch forward."""
    custom = (Y_l - pred_l) ** 2
    lens = jnp.sum(~jnp.isnan(nan_array), axis=1).astype(jnp.float32)
    means = jnp.sum(custom, axis=1) / lens
    return jnp.mean(means).astype(jnp.float32)


def _make_inputs(key, B, N, nan_frac=0.3):
    k_y, k_p, k_n, k_m = jax.random.split(key, 4)
    Y_l = jax.random.normal(k_y, (B, N), dtype=jnp.float32)
    pred_l = jax.random.normal(k_p, (B, N), dtype=jnp.float32)
    base = jax.random.normal(k_n, (B, N), dtype=jnp.float32)
    nan_mask = jax.random.uniform(k_m, (B, N)) < nan_frac
    # Keep column 0 finite so every row has lens > 0 (as the PyTorch module
    # implicitly assumes).
    nan_mask = nan_mask.at[:, 0].set(False)
    nan_array = jnp.where(nan_mask, jnp.float32(jnp.nan), base)
    return Y_l, pred_l, nan_array


if __name__ == "__main__":
    key = jax.random.PRNGKey(0)
    k_a, k_b = jax.random.split(key, 2)

    # Non-aligned B=20, N=300: exercises both remainder-masking paths.
    Y_l, pred_l, nan_array = _make_inputs(k_a, 20, 300)
    ref = obs_loss_ref(Y_l, pred_l, nan_array)

    # 1) deliberately tiny tiles -> grid (3, 3), row+column remainder paths.
    out1 = jax.block_until_ready(obs_loss(Y_l, pred_l, nan_array, tb=8, tn=128))
    assert jnp.allclose(out1, ref, rtol=1e-5, atol=1e-6), (out1, ref)

    # 2) default tiles (tb=16, tn=384, nb=2): single masked N-tile path.
    out2 = jax.block_until_ready(obs_loss(Y_l, pred_l, nan_array))
    assert jnp.allclose(out2, ref, rtol=1e-5, atol=1e-6), (out2, ref)

    # 3) aligned B=16, N=512: pure unmasked steady-state path, nb=2.
    Y2, P2, NA2 = _make_inputs(k_b, 16, 512)
    ref2 = obs_loss_ref(Y2, P2, NA2)
    out3 = jax.block_until_ready(obs_loss(Y2, P2, NA2))
    assert jnp.allclose(out3, ref2, rtol=1e-5, atol=1e-6), (out3, ref2)

    print("KERNEL_OK")
</pallas_src>

<mosaic_0001>
module attributes {stable_mosaic.version = 11 : i64} {
  func.func @_obs_loss_kernel(%arg0: i32, %arg1: i32, %arg2: memref<8x128xf32, #tpu.memory_space<vmem>>, %arg3: memref<8x128xf32, #tpu.memory_space<vmem>>, %arg4: memref<8x128xf32, #tpu.memory_space<vmem>>, %arg5: memref<1x8x128xf32, #tpu.memory_space<vmem>>, %arg6: memref<8x128xf32, #tpu.memory_space<vmem>>, %arg7: memref<8x128xf32, #tpu.memory_space<vmem>>) attributes {dimension_semantics = [#tpu.dimension_semantics<parallel>, #tpu.dimension_semantics<arbitrary>], iteration_bounds = array<i64: 3, 3>, scalar_prefetch = 0 : i64, scratch_operands = 2 : i64, tpu.core_type = #tpu.core_type<tc>, window_params = [{transform_indices = @transform_0, window_bounds = array<i64: 8, 128>}, {transform_indices = @transform_1, window_bounds = array<i64: 8, 128>}, {transform_indices = @transform_2, window_bounds = array<i64: 8, 128>}, {transform_indices = @transform_3, window_bounds = array<i64: 1, 8, 128>}]} {
    %c0_i32 = arith.constant 0 : i32
    %0 = arith.cmpi eq, %arg1, %c0_i32 : i32
    %1 = arith.extui %0 : i1 to i32
    %c0_i32_0 = arith.constant 0 : i32
    %2 = arith.cmpi ne, %1, %c0_i32_0 : i32
    scf.if %2 {
      %cst = arith.constant 0.000000e+00 : f32
      %12 = vector.broadcast %cst : f32 to vector<8x128xf32>
      %c0 = arith.constant 0 : index
      %c0_6 = arith.constant 0 : index
      %13 = vector.load %arg6[%c0, %c0_6] : memref<8x128xf32, #tpu.memory_space<vmem>>, vector<8x128xf32>
      tpu.vector_store %arg6[%c0, %c0_6], %12 {strides = array<i32>} : memref<8x128xf32, #tpu.memory_space<vmem>>, vector<8x128xf32>,
      %cst_7 = arith.constant 0.000000e+00 : f32
      %14 = vector.broadcast %cst_7 : f32 to vector<8x128xf32>
      %c0_8 = arith.constant 0 : index
      %c0_9 = arith.constant 0 : index
      %15 = vector.load %arg7[%c0_8, %c0_9] : memref<8x128xf32, #tpu.memory_space<vmem>>, vector<8x128xf32>
      tpu.vector_store %arg7[%c0_8, %c0_9], %14 {strides = array<i32>} : memref<8x128xf32, #tpu.memory_space<vmem>>, vector<8x128xf32>,
    } else {
    }
    %c2_i32 = arith.constant 2 : i32
    %3 = arith.cmpi eq, %arg1, %c2_i32 : i32
    %4 = arith.extui %3 : i1 to i32
    %c0_i32_1 = arith.constant 0 : i32
    %5 = arith.cmpi ne, %4, %c0_i32_1 : i32
    scf.if %5 {
      %c0 = arith.constant 0 : index
      %c0_6 = arith.constant 0 : index
      %12 = vector.load %arg2[%c0, %c0_6] : memref<8x128xf32, #tpu.memory_space<vmem>>, vector<8x128xf32>
      %c0_7 = arith.constant 0 : index
      %c0_8 = arith.constant 0 : index
      %13 = vector.load %arg3[%c0_7, %c0_8] : memref<8x128xf32, #tpu.memory_space<vmem>>, vector<8x128xf32>
      %14 = arith.subf %12, %13 : vector<8x128xf32>
      %15 = arith.mulf %14, %14 : vector<8x128xf32>
      %c0_9 = arith.constant 0 : index
      %c0_10 = arith.constant 0 : index
      %16 = vector.load %arg4[%c0_9, %c0_10] : memref<8x128xf32, #tpu.memory_space<vmem>>, vector<8x128xf32>
      %17 = arith.cmpf one, %16, %16 : vector<8x128xf32>
      %cst = arith.constant 0.000000e+00 : f32
      %cst_11 = arith.constant 1.000000e+00 : f32
      %18 = vector.broadcast %cst : f32 to vector<8x128xf32>
      %19 = vector.broadcast %cst_11 : f32 to vector<8x128xf32>
      %20 = arith.select %17, %18, %19 : vector<8x128xi1>, vector<8x128xf32>
      %21 = tpu.iota {dimensions = array<i32: 1>} : vector<1x128xi32>
      %c44_i32 = arith.constant 44 : i32
      %22 = vector.broadcast %c44_i32 : i32 to vector<1x128xi32>
      %23 = arith.cmpi slt, %21, %22 : vector<1x128xi32>
      %cst_12 = arith.constant 0.000000e+00 : f32
      %24 = vector.shape_cast %23 : vector<1x128xi1> to vector<1x128xi1>
      %25 = vector.broadcast %24 : vector<1x128xi1> to vector<8x128xi1>
      %26 = vector.broadcast %cst_12 : f32 to vector<8x128xf32>
      %27 = arith.select %25, %15, %26 : vector<8x128xi1>, vector<8x128xf32>
      %cst_13 = arith.constant 0.000000e+00 : f32
      %28 = vector.shape_cast %23 : vector<1x128xi1> to vector<1x128xi1>
      %29 = vector.broadcast %28 : vector<1x128xi1> to vector<8x128xi1>
      %30 = vector.broadcast %cst_13 : f32 to vector<8x128xf32>
      %31 = arith.select %29, %20, %30 : vector<8x128xi1>, vector<8x128xf32>
      %c0_14 = arith.constant 0 : index
      %c0_15 = arith.constant 0 : index
      %32 = vector.load %arg6[%c0_14, %c0_15] : memref<8x128xf32, #tpu.memory_space<vmem>>, vector<8x128xf32>
      %33 = arith.addf %32, %27 : vector<8x128xf32>
      %c0_16 = arith.constant 0 : index
      %c0_17 = arith.constant 0 : index
      %34 = vector.load %arg6[%c0_16, %c0_17] : memref<8x128xf32, #tpu.memory_space<vmem>>, vector<8x128xf32>
      tpu.vector_store %arg6[%c0_16, %c0_17], %33 {strides = array<i32>} : memref<8x128xf32, #tpu.memory_space<vmem>>, vector<8x128xf32>,
      %c0_18 = arith.constant 0 : index
      %c0_19 = arith.constant 0 : index
      %35 = vector.load %arg7[%c0_18, %c0_19] : memref<8x128xf32, #tpu.memory_space<vmem>>, vector<8x128xf32>
      %36 = arith.addf %35, %31 : vector<8x128xf32>
      %c0_20 = arith.constant 0 : index
      %c0_21 = arith.constant 0 : index
      %37 = vector.load %arg7[%c0_20, %c0_21] : memref<8x128xf32, #tpu.memory_space<vmem>>, vector<8x128xf32>
      tpu.vector_store %arg7[%c0_20, %c0_21], %36 {strides = array<i32>} : memref<8x128xf32, #tpu.memory_space<vmem>>, vector<8x128xf32>,
    } else {
    }
    %c2_i32_2 = arith.constant 2 : i32
    %6 = arith.cmpi ne, %arg1, %c2_i32_2 : i32
    %7 = arith.extui %6 : i1 to i32
    %c0_i32_3 = arith.constant 0 : i32
    %8 = arith.cmpi ne, %7, %c0_i32_3 : i32
    scf.if %8 {
      %c0 = arith.constant 0 : index
      %c0_6 = arith.constant 0 : index
      %12 = vector.load %arg2[%c0, %c0_6] : memref<8x128xf32, #tpu.memory_space<vmem>>, vector<8x128xf32>
      %c0_7 = arith.constant 0 : index
      %c0_8 = arith.constant 0 : index
      %13 = vector.load %arg3[%c0_7, %c0_8] : memref<8x128xf32, #tpu.memory_space<vmem>>, vector<8x128xf32>
      %14 = arith.subf %12, %13 : vector<8x128xf32>
      %15 = arith.mulf %14, %14 : vector<8x128xf32>
      %c0_9 = arith.constant 0 : index
      %c0_10 = arith.constant 0 : index
      %16 = vector.load %arg4[%c0_9, %c0_10] : memref<8x128xf32, #tpu.memory_space<vmem>>, vector<8x128xf32>
      %17 = arith.cmpf one, %16, %16 : vector<8x128xf32>
      %cst = arith.constant 0.000000e+00 : f32
      %cst_11 = arith.constant 1.000000e+00 : f32
      %18 = vector.broadcast %cst : f32 to vector<8x128xf32>
      %19 = vector.broadcast %cst_11 : f32 to vector<8x128xf32>
      %20 = arith.select %17, %18, %19 : vector<8x128xi1>, vector<8x128xf32>
      %c0_12 = arith.constant 0 : index
      %c0_13 = arith.constant 0 : index
      %21 = vector.load %arg6[%c0_12, %c0_13] : memref<8x128xf32, #tpu.memory_space<vmem>>, vector<8x128xf32>
      %22 = arith.addf %21, %15 : vector<8x128xf32>
      %c0_14 = arith.constant 0 : index
      %c0_15 = arith.constant 0 : index
      %23 = vector.load %arg6[%c0_14, %c0_15] : memref<8x128xf32, #tpu.memory_space<vmem>>, vector<8x128xf32>
      tpu.vector_store %arg6[%c0_14, %c0_15], %22 {strides = array<i32>} : memref<8x128xf32, #tpu.memory_space<vmem>>, vector<8x128xf32>,
      %c0_16 = arith.constant 0 : index
      %c0_17 = arith.constant 0 : index
      %24 = vector.load %arg7[%c0_16, %c0_17] : memref<8x128xf32, #tpu.memory_space<vmem>>, vector<8x128xf32>
      %25 = arith.addf %24, %20 : vector<8x128xf32>
      %c0_18 = arith.constant 0 : index
      %c0_19 = arith.constant 0 : index
      %26 = vector.load %arg7[%c0_18, %c0_19] : memref<8x128xf32, #tpu.memory_space<vmem>>, vector<8x128xf32>
      tpu.vector_store %arg7[%c0_18, %c0_19], %25 {strides = array<i32>} : memref<8x128xf32, #tpu.memory_space<vmem>>, vector<8x128xf32>,
    } else {
    }
    %c2_i32_4 = arith.constant 2 : i32
    %9 = arith.cmpi eq, %arg1, %c2_i32_4 : i32
    %10 = arith.extui %9 : i1 to i32
    %c0_i32_5 = arith.constant 0 : i32
    %11 = arith.cmpi ne, %10, %c0_i32_5 : i32
    scf.if %11 {
      %c0 = arith.constant 0 : index
      %c0_6 = arith.constant 0 : index
      %12 = vector.load %arg6[%c0, %c0_6] : memref<8x128xf32, #tpu.memory_space<vmem>>, vector<8x128xf32>
      %cst = arith.constant dense<0.000000e+00> : vector<8xf32>
      %13 = vector.multi_reduction <add>, %12, %cst [1] : vector<8x128xf32> to vector<8xf32>
      %14 = vector.shape_cast %13 : vector<8xf32> to vector<8x1xf32>
      %c0_7 = arith.constant 0 : index
      %c0_8 = arith.constant 0 : index
      %15 = vector.load %arg7[%c0_7, %c0_8] : memref<8x128xf32, #tpu.memory_space<vmem>>, vector<8x128xf32>
      %cst_9 = arith.constant dense<0.000000e+00> : vector<8xf32>
      %16 = vector.multi_reduction <add>, %15, %cst_9 [1] : vector<8x128xf32> to vector<8xf32>
      %17 = vector.shape_cast %16 : vector<8xf32> to vector<8x1xf32>
      %18 = arith.divf %14, %17 : vector<8x1xf32>
      %19 = tpu.iota {dimensions = array<i32: 0>} : vector<8x1xi32>
      %c8_i32 = arith.constant 8 : i32
      %20 = arith.muli %arg0, %c8_i32 : i32
      %21 = vector.broadcast %20 : i32 to vector<8x1xi32>
      %22 = arith.addi %19, %21 : vector<8x1xi32>
      %c20_i32 = arith.constant 20 : i32
      %23 = vector.broadcast %c20_i32 : i32 to vector<8x1xi32>
      %24 = arith.cmpi slt, %22, %23 : vector<8x1xi32>
      %cst_10 = arith.constant 0.000000e+00 : f32
      %25 = vector.broadcast %cst_10 : f32 to vector<8x1xf32>
      %26 = arith.select %24, %18, %25 : vector<8x1xi1>, vector<8x1xf32>
      %27 = vector.shape_cast %26 : vector<8x1xf32> to vector<1x8x1xf32>
      %cst_11 = arith.constant dense<0.000000e+00> : vector<1xf32>
      %28 = vector.multi_reduction <add>, %27, %cst_11 [1, 2] : vector<1x8x1xf32> to vector<1xf32>
      %29 = vector.shape_cast %28 : vector<1xf32> to vector<1x1x1xf32>
      %30 = vector.extract %29[0, 0, 0] : f32 from vector<1x1x1xf32>
      %31 = vector.broadcast %30 : f32 to vector<1x8x128xf32>
      %c0_12 = arith.constant 0 : index
      %c0_13 = arith.constant 0 : index
      %c0_14 = arith.constant 0 : index
      %32 = vector.load %arg5[%c0_12, %c0_13, %c0_14] : memref<1x8x128xf32, #tpu.memory_space<vmem>>, vector<1x8x128xf32>
      tpu.vector_store %arg5[%c0_12, %c0_13, %c0_14], %31 {strides = array<i32>} : memref<1x8x128xf32, #tpu.memory_space<vmem>>, vector<1x8x128xf32>,
    } else {
    }
    return
  }
  func.func @transform_0(%arg0: i32, %arg1: i32) -> (i32, i32) {
    %c0_i32 = arith.constant 0 : i32
    return %arg0, %arg1 : i32, i32
  }
  func.func @transform_1(%arg0: i32, %arg1: i32) -> (i32, i32) {
    %c0_i32 = arith.constant 0 : i32
    return %arg0, %arg1 : i32, i32
  }
  func.func @transform_2(%arg0: i32, %arg1: i32) -> (i32, i32) {
    %c0_i32 = arith.constant 0 : i32
    return %arg0, %arg1 : i32, i32
  }
  func.func @transform_3(%arg0: i32, %arg1: i32) -> (i32, i32, i32) {
    %c0_i32 = arith.constant 0 : i32
    %c0_i32_0 = arith.constant 0 : i32
    %c0_i32_1 = arith.constant 0 : i32
    return %arg0, %c0_i32, %c0_i32_0 : i32, i32, i32
  }
}

</mosaic_0001>

<bundles_post_ra>
// kernel: tpu_custom_call.1
= control target key start
LH: loop header
LB: loop body
LE: loop exit
PB: predicated region body
PF: predicated region fallthrough
CT: control target
= control target key end

     0   :  { %s1160_s0 = inlined_call_operand.hbm [shape: f32[20,300], index: 0, kind: input, shape index: {}]   ;;  %s1161_s1 = inlined_call_operand.hbm [shape: f32[20,300], index: 1, kind: input, shape index: {}]   ;;  %s1162_s2 = inlined_call_operand.hbm [shape: f32[20,300], index: 2, kind: input, shape index: {}]   ;;  %s1163_s3 = inlined_call_operand.hbm [shape: f32[3,8,128], index: 3, kind: output, shape index: {}]  }
   0x1   :  { %1171 = sst [smem:[#allocation22_spill]] %s1161_s1 }
   0x2   :  { %8 = vsyncpa [#allocation5], 0 }
   0x3   :  { %10 = vsyncpa [#allocation5 + $0x1], 0 }
   0x4   :  { %11 = vsyncpa [#allocation8], 0 }
   0x5   :  { %13 = vsyncpa [#allocation8 + $0x1], 0 }
   0x6   :  { %14 = vsyncpa [#allocation6], 0 }
   0x7   :  { %16 = vsyncpa [#allocation6 + $0x1], 0  ;;  %s886_s12 = smov 0   ;;  %s888_s13 = smov 0  }
   0x8   :  { %s890_s14 = smov 0   ;;  %s892_s15 = smov 0  }
   0x9   :  { %s894_s16 = smov 0   ;;  %s896_s17 = smov 0  }
   0xa   :  { %s898_s18 = smov 0   ;;  %s900_s19 = smov 0  }
   0xb   :  { %s902_s20 = smov 0   ;;  %s904_s21 = smov 0  }
   0xc   :  { %s906_s22 = smov 0  }
   0xd LB: > { %1172 = sst [smem:[#allocation14_spill]] %s825_s14  ;;  %s940_s23 = sadd.s32 4294967295, %s857_s22   ;;  %s857_s22 = sphi %s906_s22, %s22_s22   ;;  %s853_s21 = sphi %s904_s21, %s1195_s21   ;;  %s849_s20 = sphi %s902_s20, %s1194_s20   ;;  %s845_s19 = sphi %s900_s19, %s1193_s19   ;;  %s841_s18 = sphi %s898_s18, %s1192_s18   ;;  %s837_s17 = sphi %s896_s17, %s1200_s17   ;;  %s833_s16 = sphi %s894_s16, %s1199_s16   ;;  %s829_s15 = sphi %s892_s15, %s1198_s15   ;;  %s825_s14 = sphi %s890_s14, %s1190_s14   ;;  %s821_s13 = sphi %s888_s13, %s1197_s13   ;;  %s817_s12 = sphi %s886_s12, %s1196_s12  }
   0xe   : > { %1173 = sst [smem:[#allocation15_spill]] %s849_s20  ;;  %s504_s24 = sadd.s32 4294967294, %s857_s22  }
   0xf   : > { %1174 = sst [smem:[#allocation16_spill]] %s853_s21  ;;  %s31_s25 = sadd.s32 1, %s849_s20 }
  0x10   : > { %s34_s26 = sadd.s32 1, %s853_s21  ;;  %p32_p0 = scmp.ge.s32.totalorder %s31_s25, 3 }
  0x11   : > { %s43_s27 = sadd.s32 1, %s837_s17  ;;  %p50_p1 = scmp.ne.s32.totalorder %s837_s17, %s833_s16 }
  0x12   : > { %p51_p2 = scmp.eq.s32.totalorder %s857_s22, 0  ;;  %s1202_s25 = smov (%p32_p0, %s31_s25), 0 }
  0x13   : > { %1175 = sst [smem:[#allocation17_spill]] %s1202_s25  ;;  %s1204_s26 = smov (!%p32_p0, %s34_s26), %s853_s21 }
  0x14   : > { %s39_s28 = ssub.s32 %s849_s20, %s1202_s25  ;;  %p954_p3 = por %p51_p2, %p50_p1 }
  0x15   : > { %p36_p4 = scmp.ge.s32.totalorder %s1204_s26, 3  ;;  %p56_p5 = scmp.ne.s32.totalorder %s833_s16, %s829_s15 }
  0x16   : > { %p57_p6 = scmp.eq.s32.totalorder %s940_s23, 0  ;;  %s125_s30 = sadd.s32 1, %s825_s14 }
  0x17   : > { %s1206_s26 = smov (%p36_p4, %s1204_s26), 0  ;;  %p135_p8 = scmp.ne.s32.totalorder %s825_s14, %s821_s13 }
  0x18   : > { %1177 = sst [smem:[#allocation18_spill]] %s1206_s26  ;;  %p963_p7 = por %p57_p6, %p56_p5 }
  0x19   : > { %s38_s5 = ssub.s32 %s853_s21, %s1206_s26  ;;  %p136_p9 = scmp.eq.s32.totalorder %s940_s23, 8 }
  0x1a   : > { %s40_s6 = sor.u32 %s39_s28, %s38_s5  ;;  %p123_p10 = scmp.eq.s32.totalorder %s38_s5, 0 }
  0x1b   : > { %p41_p11 = scmp.eq.s32.totalorder %s40_s6, 0  ;;  %p972_p12 = por %p136_p9, %p135_p8 }
  0x1c   : > { %s977_s8 = scalar_select %p123_p10, %s825_s14, %s125_s30  }
  0x1d   : > { %s980_s9 = scalar_select %p41_p11, %s837_s17, %s43_s27  }
  0x1e   : > { %1180 = sst [smem:[#allocation19_spill]] %s977_s8  ;;  %p141_p13 = scmp.ne.s32.totalorder %s821_s13, %s817_s12 }
  0x1f   : > { %1181 = sst [smem:[#allocation20_spill]] %s980_s9  ;;  %p142_p0 = scmp.eq.s32.totalorder %s504_s24, 8 }
  0x20   : > { %p554_p1 = scmp.lt.s32.totalorder %s857_s22, 9  ;;  %s1166_s11 = sand.u32 1, %s837_s17  }
  0x21   : > { %p985_p2 = por %p142_p0, %p141_p13  ;;  %s992_s15 = sshll.u32 %s1166_s11, 3 }
  0x22   : > { %s527_s28 = smul.u32 3, %s853_s21  ;;  %p997_p4 = pnand %p554_p1, %p954_p3 }
  0x23   : > { %s1182_s10 = scalar_select %p985_p2, 1, 0 }
  0x24   : > { %s182_s27 = sand.u32 1, %s857_s22   ;;  %s171_s24 = sadd.s32 %s849_s20, %s527_s28 }
  0x25   : > { %1183 = sst [smem:[#allocation21_spill]] %s1182_s10  ;;  %s1003_s5 = sshll.u32 %s171_s24, 7 }
  0x26   : > { %s1185_s1 = sld [smem:[#allocation22_spill]]  ;;  %s186_s11 = scalar_lea.vmem [#allocation7], %s992_s15 }
  0x27   : > { %s195_s9 = sshll.u32 %s186_s11, 4  ;;  %p513_p5 = scmp.ge.s32.totalorder %s857_s22, 1  ;;  %s196_s9 = int_to_ptr.vmem [resolvable:$true] %s195_s9 }
  0x28   : > { %p220_p6 = scmp.lt.s32.totalorder %s857_s22, 10  ;;  %s1012_s29 = scalar_lea.sflag [#allocation8], %s182_s27 }
  0x29   : > { %p651_p3 = pneg %p997_p4  ;;  %s662_s21 = scalar_lea.vmem %s196_s9, 128 }
  0x2a   : > { %p663_p8 = scmp.ne.s32.totalorder %s196_s9, %s662_s21  ;;  %s859_s28 = smov [#allocation7]  }
  0x2b   : > { %s667_s24 = sshll.u32 %s859_s28, 4  ;;  %s668_s24 = int_to_ptr.vmem [resolvable:$false] %s667_s24 }
  0x2c   : > { %s193_s25 = scalar_lea.hbm %s1185_s1, %s1003_s5  ;;  %p665_p9 = pnand %p663_p8, %p651_p3 }
  0x2d   : > { %s669_s26 = scalar_lea.vmem %s668_s24, 256  ;;  %p670_p11 = scmp.lt.s32.totalorder %s196_s9, %s668_s24 }
  0x2e   : > { %p666_p10 = pneg %p665_p9  ;;  %p671_p13 = scmp.lt.s32.totalorder %s669_s26, %s662_s21 }
  0x30   : > { %p672_p0 = por %p671_p13, %p670_p11 }
  0x32   : > { %p673_p1 = pnand %p672_p0, %p666_p10 }
  0x34   : > { %676 = shalt.err (!%p673_p1)
}
  0x35   : > { %546 = dma.hbm_to_vmem [thread:$0]  (!%p997_p4), %s193_s25, 128, %s196_s9, %s1012_s29  }
  0x36   : > { %p1026_p8 = pnand %p513_p5, %p220_p6  ;;  %s173_s6 = scalar_lea.hbm %s1160_s0, %s1003_s5 }
  0x37   : > { %s166_s28 = scalar_lea.vmem [#allocation4], %s992_s15  ;;  %s213_s20 = scalar_lea.hbm %s1162_s2, %s1003_s5 }
  0x38   : > { %s175_s24 = sshll.u32 %s166_s28, 4  ;;  %s1187_s8 = sand.u32 1, %s837_s17   ;;  %s176_s24 = int_to_ptr.vmem [resolvable:$true] %s175_s24 }
  0x39   : > { %s163_s14 = scalar_lea.sflag [#allocation5], %s1187_s8  ;;  %s690_s25 = scalar_lea.vmem %s176_s24, 128 }
  0x3a   : > { %p691_p9 = scmp.ne.s32.totalorder %s176_s24, %s690_s25  ;;  %s860_s9 = smov [#allocation4]  }
  0x3b   : > { %s695_s10 = sshll.u32 %s860_s9, 4  ;;  %s696_s10 = int_to_ptr.vmem [resolvable:$false] %s695_s10 }
  0x3c   : > { %p693_p5 = pnand %p691_p9, %p651_p3  ;;  %s697_s21 = scalar_lea.vmem %s696_s10, 256 }
  0x3d   : > { %p698_p10 = scmp.lt.s32.totalorder %s176_s24, %s696_s10  ;;  %p699_p11 = scmp.lt.s32.totalorder %s697_s21, %s690_s25 }
  0x3e   : > { %p694_p6 = pneg %p693_p5 }
  0x3f   : > { %p700_p13 = por %p699_p11, %p698_p10 }
  0x41   : > { %p701_p0 = pnand %p700_p13, %p694_p6 }
  0x43   : > { %704 = shalt.err (!%p701_p0)
}
  0x44   : > { %543 = dma.hbm_to_vmem [thread:$0]  (!%p997_p4), %s173_s6, 128, %s176_s24, %s163_s14  }
  0x45   : > { %s206_s1 = scalar_lea.vmem [#allocation9], %s992_s15  ;;  %s861_s28 = smov [#allocation9]  }
  0x46   : > { %s215_s8 = sshll.u32 %s206_s1, 4  ;;  %s723_s10 = sshll.u32 %s861_s28, 4  ;;  %s216_s8 = int_to_ptr.vmem [resolvable:$true] %s215_s8  ;;  %s724_s10 = int_to_ptr.vmem [resolvable:$false] %s723_s10 }
  0x47   : > { %s718_s27 = scalar_lea.vmem %s216_s8, 128  ;;  %s725_s26 = scalar_lea.vmem %s724_s10, 256 }
  0x48   : > { %p719_p1 = scmp.ne.s32.totalorder %s216_s8, %s718_s27  ;;  %p726_p6 = scmp.lt.s32.totalorder %s216_s8, %s724_s10 }
  0x49   : > { %p727_p10 = scmp.lt.s32.totalorder %s725_s26, %s718_s27 }
  0x4a   : > { %p721_p9 = pnand %p719_p1, %p651_p3 }
  0x4b   : > { %p728_p11 = por %p727_p10, %p726_p6 }
  0x4c   : > { %p722_p5 = pneg %p721_p9 }
  0x4e   : > { %p729_p13 = pnand %p728_p11, %p722_p5 }
  0x50   : > { %732 = shalt.err (!%p729_p13)
}
  0x51   : > { %549 = dma.hbm_to_vmem [thread:$0]  (!%p997_p4), %s213_s20, 128, %s216_s8, %s1012_s29  }
  0x52   : > { %224 = sbr.rel (%p1026_p8) target bundleno = 519 (0x207), region = 32  ;;  %s226_s6 = sand.u32 (!%p1026_p8), 1, %s833_s16  }
  0x53   : > { %s1061_s24 = sshll.u32 (!%p1026_p8), %s226_s6, 3  ;;  %s227_s25 = scalar_lea.sflag (!%p1026_p8), [#allocation5], %s226_s6 }
  0x54   : > { %s230_s9 = scalar_lea.vmem (!%p1026_p8), [#allocation4], %s1061_s24 }
  0x57   : > { %804 = dma.done.wait (%p963_p7), %s227_s25, 128  }
  0x58   : > { %806 = vsyncadd (%p963_p7), %s227_s25, 4294967168  ;;  %s235_s20 = sand.u32 1, %s940_s23   ;;  %s239_s5 = scalar_lea.vmem [#allocation7], %s1061_s24 }
  0x59   : > { %s236_s30 = scalar_lea.sflag [#allocation8], %s235_s20 }
  0x5a   : > { %808 = dma.done.wait (%p963_p7), %s236_s30, 256  }
  0x5b   : > { %810 = vsyncadd (%p963_p7), %s236_s30, 4294967040  ;;  %s278_s29 = sand.u32 1, %s821_s13   ;;  %s248_s21 = scalar_lea.vmem [#allocation9], %s1061_s24 }
  0x5c   : > { %s1077_s11 = sshll.u32 %s278_s29, 3  ;;  %p518_p4 = scmp.ne.s32.totalorder %s841_s18, 0 }
  0x5d   : > { %s280_s1 = scalar_lea.vmem [#allocation10], %s1077_s11 }
  0x5e   : > { %284 = sbr.rel (%p518_p4) target bundleno = 101 (0x65), region = 48 }
  0x63   : > { %v862_v0 = vmov 0.0  }
  0x64   : > { %285 = vst [vmem:[#allocation2] sm:$0xff] %v862_v0  ;;  %286 = vst [vmem:[#allocation3] sm:$0xff] %v862_v0 }
  0x65 PF: > { %p519_p7 = scmp.ne.s32.totalorder %s841_s18, 2 }
  0x67   : > { %290 = sbr.rel (%p519_p7) target bundleno = 117 (0x75), region = 52 }
  0x6c   : > { %v291_v1 = vld [vmem:[%s230_s9] sm:$0xff]  ;;  %v292_v2 = vld [vmem:[%s239_s5] sm:$0xff]  ;;  %v298_v3 = vlaneseq  ;;  %v863_v9 = vmov 1.0  }
  0x6d   : > { %v293_v4 = vsub.f32 %v291_v1, %v292_v2  ;;  %v295_v5 = vld [vmem:[%s248_s21] sm:$0xff]  ;;  %v305_v8 = vld [vmem:[#allocation2] sm:$0xff]  ;;  %v308_v11 = vld [vmem:[#allocation3] sm:$0xff] }
  0x6e   : > { %v299_v6 = vand.u32 127, %v298_v3  ;;  %vm296_vm0 = vcmp.ne.f32.partialorder %v295_v5, %v295_v5 }
  0x6f   : > { %v294_v7 = vmul.f32 %v293_v4, %v293_v4  ;;  %v297_v10 = vsel %vm296_vm0, 0.0, %v863_v9 }
  0x70   : > { %vm300_vm1 = vcmp.lt.s32.totalorder %v299_v6, 44 }
  0x71   : > { %v303_v12 = vsel %vm300_vm1, %v294_v7, 0.0  ;;  %v304_v13 = vsel %vm300_vm1, %v297_v10, 0.0 }
  0x72   : > { %v306_v14 = vadd.f32 %v305_v8, %v303_v12  ;;  %v309_v15 = vadd.f32 %v308_v11, %v304_v13 }
  0x74   : > { %307 = vst [vmem:[#allocation2] sm:$0xff] %v306_v14  ;;  %310 = vst [vmem:[#allocation3] sm:$0xff] %v309_v15 }
  0x75 PF: > { %p520_p3 = scmp.eq.s32.totalorder %s841_s18, 2 }
  0x77   : > { %314 = sbr.rel (%p520_p3) target bundleno = 132 (0x84), region = 56 }
  0x7c   : > { %v315_v16 = vld [vmem:[%s230_s9] sm:$0xff]  ;;  %v316_v17 = vld [vmem:[%s239_s5] sm:$0xff]  ;;  %v864_v23 = vmov 1.0  }
  0x7d   : > { %v317_v18 = vsub.f32 %v315_v16, %v316_v17  ;;  %v319_v19 = vld [vmem:[%s248_s21] sm:$0xff]  ;;  %v325_v20 = vld [vmem:[#allocation3] sm:$0xff]  ;;  %v322_v21 = vld [vmem:[#allocation2] sm:$0xff] }
  0x7e   : > { %vm320_vm2 = vcmp.ne.f32.partialorder %v319_v19, %v319_v19 }
  0x7f   : > { %v318_v22 = vmul.f32 %v317_v18, %v317_v18  ;;  %v321_v24 = vsel %vm320_vm2, 0.0, %v864_v23 }
  0x80   : > { %v326_v25 = vadd.f32 %v325_v20, %v321_v24 }
  0x81   : > { %v323_v26 = vadd.f32 %v322_v21, %v318_v22 }
  0x82   : > { %327 = vst [vmem:[#allocation3] sm:$0xff] %v326_v25 }
  0x83   : > { %324 = vst [vmem:[#allocation2] sm:$0xff] %v323_v26 }
  0x84 PF: > { %330 = sbr.rel (%p519_p7) target bundleno = 496 (0x1f0), region = 60  ;;  %s522_s23 = sshll.u32 (!%p519_p7), %s845_s19, 3 }
  0x89   : > { %v334_v27 = vld [vmem:[#allocation3] sm:$0xff]  ;;  %v339_v30 = vlaneseq  ;;  %v342_v32 = vstv %s522_s23  ;;  %vm346_vm4 = vcmask 7168  }
  0x8a   : > { %335 = vadd.xlane.f32.xlu0 %v334_v27  ;;  %v331_v28 = vld [vmem:[#allocation2] sm:$0xff] }
  0x8b   : > { %v340_v31 = vshrl.u32 %v339_v30, 7 }
  0x8d   : > { %v343_v33 = vadd.s32 %v342_v32, %v340_v31 }
  0x8e   : > { %332 = vadd.xlane.f32.xlu0 %v331_v28 }
  0x8f   : > { %vm344_vm3 = vcmp.lt.s32.totalorder %v343_v33, 20 }
 0x113   : > { %v336_v29 = vpop.xlane.xlu0 %335 }
 0x114   : > { %647 = vrcp.f32 %v336_v29 }
 0x117   : > { %v333_v34 = vpop.xlane.xlu0 %332 }
 0x121   : > { %v648_v35 = vpop.eup %647 }
 0x122   : > { %v338_v36 = vmul.f32 %v648_v35, %v333_v34 }
 0x124   : > { %v345_v37 = vsel %vm344_vm3, %v338_v36, 0.0 }
 0x125   : > { %v347_v38 = vsel %vm346_vm4, %v345_v37, 0.0 }
 0x126   : > { %348 = vadd.xlane.f32.xlu1 %v347_v38 }
 0x1af   : > { %v349_v39 = vpop.xlane.xlu1 %348 }
 0x1b0   : > { %v350_v40 = vrot.slane %v349_v39, 4 }
 0x1b2   : > { %v351_v41 = vadd.f32 %v350_v40, %v349_v39 }
 0x1b4   : > { %v352_v42 = vrot.slane %v351_v41, 2 }
 0x1b6   : > { %v353_v43 = vadd.f32 %v352_v42, %v351_v41 }
 0x1b8   : > { %v354_v44 = vrot.slane %v353_v43, 1 }
 0x1ba   : > { %v355_v45 = vadd.f32 %v354_v44, %v353_v43 }
 0x1bc   : > { %530 = vpush %v355_v45 }
 0x1ed   : > { %s531_s18 = spop %530 }
 0x1ee   : > { %v357_v46 = vstv %s531_s18 }
 0x1ef   : > { %358 = vst [vmem:[%s280_s1] sm:$0xff] %v357_v46 }
 0x1f0 PF: > { %s524_s4 = sshll.u32 %s845_s19, 7  ;;  %s373_s10 = sshll.u32 %s280_s1, 4  ;;  %s374_s10 = int_to_ptr.vmem [resolvable:$true] %s373_s10 }
 0x1f1   : > { %s371_s28 = scalar_lea.hbm %s1163_s3, %s524_s4  ;;  %s360_s26 = scalar_lea.sflag [#allocation6], %s278_s29 }
 0x1f2   : > { %s733_s14 = scalar_lea.vmem %s374_s10, 128  ;;  %s865_s15 = smov [#allocation10]  }
 0x1f3   : > { %p734_p8 = scmp.ne.s32.totalorder %s374_s10, %s733_s14  ;;  %s737_s6 = sshll.u32 %s865_s15, 4  ;;  %s738_s6 = int_to_ptr.vmem [resolvable:$false] %s737_s6 }
 0x1f4   : > { %s739_s24 = scalar_lea.vmem %s738_s6, 256  ;;  %p740_p9 = scmp.lt.s32.totalorder %s374_s10, %s738_s6 }
 0x1f5   : > { %p735_p0 = pnand %p734_p8, %p972_p12  ;;  %p741_p5 = scmp.lt.s32.totalorder %s739_s24, %s733_s14 }
 0x1f7   : > { %p736_p1 = pneg %p735_p0  ;;  %p742_p6 = por %p741_p5, %p740_p9 }
 0x1f9   : > { %p743_p10 = pnand %p742_p6, %p736_p1 }
 0x1fb   : > { %746 = shalt.err (!%p743_p10)
}
 0x1fc   : > { %s747_s19 = scalar_lea.hbm %s371_s28, 128  ;;  %s751_s20 = scalar_lea.hbm %s1163_s3, 384 }
 0x1fd   : > { %p748_p11 = scmp.ne.s32.totalorder %s371_s28, %s747_s19  ;;  %p752_p7 = scmp.lt.s32.totalorder %s371_s28, %s1163_s3 }
 0x1fe   : > { %p753_p3 = scmp.lt.s32.totalorder %s751_s20, %s747_s19 }
 0x1ff   : > { %p749_p13 = pnand %p748_p11, %p972_p12 }
 0x200   : > { %p754_p8 = por %p753_p3, %p752_p7 }
 0x201   : > { %p750_p4 = pneg %p749_p13 }
 0x203   : > { %p755_p0 = pnand %p754_p8, %p750_p4 }
 0x205   : > { %758 = shalt.err (!%p755_p0)
}
 0x206   : > { %538 = dma.vmem_to_hbm [thread:$0]  (%p972_p12), %s374_s10, 128, %s371_s28, %s360_s26  }
 0x207 PF: > { %p555_p1 = scmp.ge.s32.totalorder %s857_s22, 2  ;;  %s385_s11 = sand.u32 1, %s817_s12  }
 0x208   : > { %s386_s21 = scalar_lea.sflag [#allocation6], %s385_s11 }
 0x209   : > { %p551_p9 = pnand %p555_p1, %p985_p2 }
 0x20b   : > { %p552_p5 = pneg %p551_p9 }
 0x20d   : > { %812 = dma.done.wait (%p552_p5), %s386_s21, 128  }
 0x20e   : > { %814 = vsyncadd (%p552_p5), %s386_s21, 4294967168  ;;  %s22_s22 = sadd.s32 1, %s857_s22   ;;  %s1189_s1 = sld [smem:[#allocation14_spill]] }
 0x20f   : > { %p19_p6 = scmp.ge.s32.totalorder %s22_s22, 11   ;;  %s1190_s14 = sld [smem:[#allocation19_spill]] }
 0x210   : > { %s1191_s7 = sld [smem:[#allocation20_spill]]  ;;  %s1196_s12 = smov %s821_s13 }
 0x211   : > { %s1192_s18 = sld [smem:[#allocation15_spill]]  ;;  %s1198_s15 = smov %s833_s16 }
 0x212   : > { %s1193_s19 = sld [smem:[#allocation16_spill]]  ;;  %s1199_s16 = smov %s837_s17 }
 0x213   : > { %s1194_s20 = sld [smem:[#allocation17_spill]]  ;;  %21 = sbr.rel (!%p19_p6) target bundleno = 13 (0xd), region = 117 }
 0x214   : > { %s1195_s21 = sld [smem:[#allocation18_spill]]  ;;  %s1197_s13 = smov %s1189_s1 }
 0x216   : > { %s1200_s17 = smov %s1191_s7 }
 0x218   :  { %391 = vsyncpa [#allocation5], 1 }
 0x219   :  { %393 = vsyncpa [#allocation5 + $0x1], 1 }
 0x21a   :  { %394 = vsyncpa [#allocation8], 1 }
 0x21b   :  { %396 = vsyncpa [#allocation8 + $0x1], 1 }
 0x21c   :  { %397 = vsyncpa [#allocation6], 1 }
 0x21d   :  { %399 = vsyncpa [#allocation6 + $0x1], 1 }

</bundles_post_ra>
